<compile_context>
chip_gen: v7x
topology: tpu7x:2x2x1
jax: 0.10.0
libtpu: 0.0.40
codegen_flags: <defaults>
</compile_context>

<pallas_src>
import functools

import jax
import jax.numpy as jnp
from jax.experimental import pallas as pl
from jax.experimental.pallas import tpu as pltpu

LANES = 128


def _cdiv(a, b):
    return -(-a // b)


def _round_up(x, m):
    return ((x + m - 1) // m) * m


def _sublane_packing(dtype):
    # f32 -> 8, bf16/f16 -> 16, int8/fp8 -> 32 (sub-32-bit packs along sublanes).
    bits = jnp.dtype(dtype).itemsize * 8
    return max(8, (32 // max(bits, 1)) * 8)


def _num_tensorcores():
    # v7x has 2 TensorCores per chip; v5e/v6e have 1.  Fall back to 1 if the
    # query is unavailable -- the kernel is correct for any value.
    try:
        info = pltpu.get_tpu_info()
    except Exception:
        return 1
    for name in ("num_cores", "num_tensorcores", "tensorcore_count", "core_count"):
        v = getattr(info, name, None)
        try:
            v = int(v)
        except (TypeError, ValueError):
            continue
        if v > 0:
            return v
    return 1


def _loss_kernel(yp_ref, yt_ref, out_ref, sq_acc, abs_acc, *,
                 rows_total, tile_rows, steps_per_split, first_masked_step,
                 any_masked, alpha):
    """Accumulating reduction over (tile_rows, 128) row-tiles.

    Grid: (num_splits [parallel], steps_per_split [arbitrary]).  Each split owns
    a contiguous range of row-blocks and writes one lane-dense (1, 128) row of
    per-lane partial sums of (d^2 + alpha*|d|).
    """
    c = pl.program_id(0)           # TensorCore split (parallel axis)
    i = pl.program_id(1)           # reduction step within the split (arbitrary)
    s = c * steps_per_split + i    # global row-block index (may run past the end)

    @pl.when(i == 0)
    def _():
        sq_acc[...] = jnp.zeros_like(sq_acc)
        abs_acc[...] = jnp.zeros_like(abs_acc)

    def diff():
        return yp_ref[...].astype(jnp.float32) - yt_ref[...].astype(jnp.float32)

    def accumulate(d):
        # Per-lane partial sums: pure VPU add tree each step; the single
        # cross-lane reduction happens once, in the wrapper.
        sq_acc[...] += jnp.sum(d * d, axis=0, keepdims=True)
        abs_acc[...] += jnp.sum(jnp.abs(d), axis=0, keepdims=True)

    if not any_masked:
        # Fully aligned & evenly split: no tail handling compiled in at all.
        accumulate(diff())
    else:
        # Steady-state blocks: plain accumulate (mask work kept out of the hot loop).
        @pl.when(s < first_masked_step)
        def _():
            accumulate(diff())

        # Tail blocks only: rows at/after `rows_total` hold padding garbage; mask
        # BEFORE squaring/abs so NaN/Inf padding cannot propagate.  Fully
        # out-of-range blocks (uneven split) get remaining <= 0 -> contribute 0.
        @pl.when(s >= first_masked_step)
        def _():
            remaining = rows_total - s * tile_rows
            row_ids = jax.lax.broadcasted_iota(jnp.int32, (tile_rows, LANES), 0)
            d = jnp.where(row_ids < remaining, diff(), jnp.float32(0.0))
            accumulate(d)

    @pl.when(i == steps_per_split - 1)
    def _():
        out_ref[...] = sq_acc[...] + jnp.float32(alpha) * abs_acc[...]


def mse_reg_loss(y_pred, y_true, alpha=0.1, tile_rows=8192, num_splits=None):
    assert y_pred.shape == y_true.shape
    n_elems = int(y_pred.size)
    assert n_elems > 0

    # Flatten (free for contiguous inputs); keep native dtype.
    yp = jnp.ravel(y_pred)
    yt = jnp.ravel(y_true)

    # TODO(synk): padded-copy fallback for element counts not divisible by 128.
    rem = n_elems % LANES
    if rem:
        pad = LANES - rem
        yp = jnp.pad(yp, (0, pad))
        yt = jnp.pad(yt, (0, pad))
    rows_total = (n_elems + LANES - 1) // LANES

    yp2 = yp.reshape(rows_total, LANES)
    yt2 = yt.reshape(rows_total, LANES)

    # Row tile: large blocks amortize the ~0.35us/grid-step overhead.
    # 8192 rows = 4 MiB/input/block (f32) -> 2 inputs x 2 pipeline buffers =
    # 16 MiB VMEM, comfortably under the 32 MiB limit on v5e/v6e/v7x.
    pack = _sublane_packing(y_pred.dtype)
    tr = max(pack, min(int(tile_rows), _round_up(rows_total, pack)))
    tr = _round_up(tr, pack)

    total_steps = _cdiv(rows_total, tr)

    if num_splits is None:
        num_splits = _num_tensorcores()
    num_splits = max(1, min(int(num_splits), total_steps))
    steps_per_split = _cdiv(total_steps, num_splits)

    first_masked_step = rows_total // tr  # first (partial) row-block needing a mask
    uneven_split = (num_splits * steps_per_split != total_steps)
    any_masked = (rows_total % tr != 0) or uneven_split

    if not uneven_split:
        in_index = lambda c, i: (c * steps_per_split + i, 0)
    else:
        # Uneven split: clamp so no DMA is issued past the array; the kernel
        # masks those blocks' contribution to zero.
        last_block = total_steps - 1
        in_index = lambda c, i: (jnp.minimum(c * steps_per_split + i, last_block), 0)

    kernel = functools.partial(
        _loss_kernel,
        rows_total=rows_total,
        tile_rows=tr,
        steps_per_split=steps_per_split,
        first_masked_step=first_masked_step,
        any_masked=any_masked,
        alpha=float(alpha),
    )

    partials = pl.pallas_call(
        kernel,
        out_shape=jax.ShapeDtypeStruct((num_splits, LANES), jnp.float32),
        grid_spec=pltpu.PrefetchScalarGridSpec(
            num_scalar_prefetch=0,
            grid=(num_splits, steps_per_split),
            in_specs=[
                pl.BlockSpec((tr, LANES), in_index),
                pl.BlockSpec((tr, LANES), in_index),
            ],
            out_specs=pl.BlockSpec((1, LANES), lambda c, i: (c, 0)),
            scratch_shapes=[
                pltpu.VMEM((1, LANES), jnp.float32),
                pltpu.VMEM((1, LANES), jnp.float32),
            ],
        ),
        compiler_params=pltpu.CompilerParams(
            dimension_semantics=("parallel", "arbitrary"),
            vmem_limit_bytes=32 * 1024 * 1024,
        ),
    )(yp2, yt2)

    # One tiny cross-lane reduce + normalization outside the kernel.
    return jnp.sum(partials) * jnp.float32(1.0 / n_elems)


def _ref_loss(y_pred, y_true, alpha=0.1):
    d = y_pred.astype(jnp.float32) - y_true.astype(jnp.float32)
    return jnp.mean(d * d) + alpha * jnp.mean(jnp.abs(d))


if __name__ == "__main__":
    key = jax.random.PRNGKey(0)
    k1, k2, k3, k4 = jax.random.split(key, 4)

    # Case 1: NCHW-like shape, element count divisible by 128 (zero-copy,
    # single grid step, no mask branch compiled).
    y_pred = jax.random.normal(k1, (2, 4, 16, 16), dtype=jnp.float32)
    y_true = jax.random.normal(k2, (2, 4, 16, 16), dtype=jnp.float32)
    loss = mse_reg_loss(y_pred, y_true, alpha=0.1)
    jax.block_until_ready(loss)
    ref = _ref_loss(y_pred, y_true, alpha=0.1)
    assert jnp.allclose(loss, ref, rtol=2e-5, atol=1e-6), (loss, ref)

    # Case 2: ragged element count + multi-step grid + forced 2-way split
    # (uneven steps-per-split) + partial last block -> exercises the clamp,
    # the tail mask branch, and the per-split partial outputs.
    y_pred2 = jax.random.normal(k3, (4, 8, 33, 37), dtype=jnp.float32)
    y_true2 = jax.random.normal(k4, (4, 8, 33, 37), dtype=jnp.float32)
    loss2 = mse_reg_loss(y_pred2, y_true2, alpha=0.1, tile_rows=64, num_splits=2)
    jax.block_until_ready(loss2)
    ref2 = _ref_loss(y_pred2, y_true2, alpha=0.1)
    assert jnp.allclose(loss2, ref2, rtol=2e-5, atol=1e-6), (loss2, ref2)

    # Case 3: bf16 inputs -> in-kernel cast + 16-row sublane packing path.
    y_pred3 = y_pred.astype(jnp.bfloat16)
    y_true3 = y_true.astype(jnp.bfloat16)
    loss3 = mse_reg_loss(y_pred3, y_true3, alpha=0.1)
    jax.block_until_ready(loss3)
    ref3 = _ref_loss(y_pred3, y_true3, alpha=0.1)
    assert jnp.allclose(loss3, ref3, rtol=2e-5, atol=1e-6), (loss3, ref3)

    print("KERNEL_OK")
</pallas_src>

<mosaic_0001>
module attributes {stable_mosaic.version = 11 : i64} {
  func.func @_loss_kernel(%arg0: i32, %arg1: i32, %arg2: memref<16x128xf32, #tpu.memory_space<vmem>>, %arg3: memref<16x128xf32, #tpu.memory_space<vmem>>, %arg4: memref<1x128xf32, #tpu.memory_space<vmem>>, %arg5: memref<1x128xf32, #tpu.memory_space<vmem>>, %arg6: memref<1x128xf32, #tpu.memory_space<vmem>>) attributes {dimension_semantics = [#tpu.dimension_semantics<parallel>, #tpu.dimension_semantics<arbitrary>], iteration_bounds = array<i64: 1, 1>, scalar_prefetch = 0 : i64, scratch_operands = 2 : i64, tpu.core_type = #tpu.core_type<tc>, window_params = [{transform_indices = @transform_0, window_bounds = array<i64: 16, 128>}, {transform_indices = @transform_1, window_bounds = array<i64: 16, 128>}, {transform_indices = @transform_2, window_bounds = array<i64: 1, 128>}]} {
    %c0_i32 = arith.constant 0 : i32
    %0 = arith.cmpi eq, %arg1, %c0_i32 : i32
    %1 = arith.extui %0 : i1 to i32
    %c0_i32_0 = arith.constant 0 : i32
    %2 = arith.cmpi ne, %1, %c0_i32_0 : i32
    scf.if %2 {
      %cst_15 = arith.constant 0.000000e+00 : f32
      %21 = vector.broadcast %cst_15 : f32 to vector<1x128xf32>
      %c0_16 = arith.constant 0 : index
      %c0_17 = arith.constant 0 : index
      %22 = vector.load %arg5[%c0_16, %c0_17] : memref<1x128xf32, #tpu.memory_space<vmem>>, vector<1x128xf32>
      tpu.vector_store %arg5[%c0_16, %c0_17], %21 {strides = array<i32>} : memref<1x128xf32, #tpu.memory_space<vmem>>, vector<1x128xf32>,
      %cst_18 = arith.constant 0.000000e+00 : f32
      %23 = vector.broadcast %cst_18 : f32 to vector<1x128xf32>
      %c0_19 = arith.constant 0 : index
      %c0_20 = arith.constant 0 : index
      %24 = vector.load %arg6[%c0_19, %c0_20] : memref<1x128xf32, #tpu.memory_space<vmem>>, vector<1x128xf32>
      tpu.vector_store %arg6[%c0_19, %c0_20], %23 {strides = array<i32>} : memref<1x128xf32, #tpu.memory_space<vmem>>, vector<1x128xf32>,
    } else {
    }
    %c0 = arith.constant 0 : index
    %c0_1 = arith.constant 0 : index
    %3 = vector.load %arg2[%c0, %c0_1] : memref<16x128xf32, #tpu.memory_space<vmem>>, vector<16x128xf32>
    %c0_2 = arith.constant 0 : index
    %c0_3 = arith.constant 0 : index
    %4 = vector.load %arg3[%c0_2, %c0_3] : memref<16x128xf32, #tpu.memory_space<vmem>>, vector<16x128xf32>
    %5 = arith.subf %3, %4 : vector<16x128xf32>
    %c0_4 = arith.constant 0 : index
    %c0_5 = arith.constant 0 : index
    %6 = vector.load %arg5[%c0_4, %c0_5] : memref<1x128xf32, #tpu.memory_space<vmem>>, vector<1x128xf32>
    %7 = arith.mulf %5, %5 : vector<16x128xf32>
    %cst = arith.constant dense<0.000000e+00> : vector<128xf32>
    %8 = vector.multi_reduction <add>, %7, %cst [0] : vector<16x128xf32> to vector<128xf32>
    %9 = vector.shape_cast %8 : vector<128xf32> to vector<1x128xf32>
    %10 = arith.addf %6, %9 : vector<1x128xf32>
    %c0_6 = arith.constant 0 : index
    %c0_7 = arith.constant 0 : index
    %11 = vector.load %arg5[%c0_6, %c0_7] : memref<1x128xf32, #tpu.memory_space<vmem>>, vector<1x128xf32>
    tpu.vector_store %arg5[%c0_6, %c0_7], %10 {strides = array<i32>} : memref<1x128xf32, #tpu.memory_space<vmem>>, vector<1x128xf32>,
    %c0_8 = arith.constant 0 : index
    %c0_9 = arith.constant 0 : index
    %12 = vector.load %arg6[%c0_8, %c0_9] : memref<1x128xf32, #tpu.memory_space<vmem>>, vector<1x128xf32>
    %13 = math.absf %5 : vector<16x128xf32>
    %cst_10 = arith.constant dense<0.000000e+00> : vector<128xf32>
    %14 = vector.multi_reduction <add>, %13, %cst_10 [0] : vector<16x128xf32> to vector<128xf32>
    %15 = vector.shape_cast %14 : vector<128xf32> to vector<1x128xf32>
    %16 = arith.addf %12, %15 : vector<1x128xf32>
    %c0_11 = arith.constant 0 : index
    %c0_12 = arith.constant 0 : index
    %17 = vector.load %arg6[%c0_11, %c0_12] : memref<1x128xf32, #tpu.memory_space<vmem>>, vector<1x128xf32>
    tpu.vector_store %arg6[%c0_11, %c0_12], %16 {strides = array<i32>} : memref<1x128xf32, #tpu.memory_space<vmem>>, vector<1x128xf32>,
    %c0_i32_13 = arith.constant 0 : i32
    %18 = arith.cmpi eq, %arg1, %c0_i32_13 : i32
    %19 = arith.extui %18 : i1 to i32
    %c0_i32_14 = arith.constant 0 : i32
    %20 = arith.cmpi ne, %19, %c0_i32_14 : i32
    scf.if %20 {
      %c0_15 = arith.constant 0 : index
      %c0_16 = arith.constant 0 : index
      %21 = vector.load %arg5[%c0_15, %c0_16] : memref<1x128xf32, #tpu.memory_space<vmem>>, vector<1x128xf32>
      %c0_17 = arith.constant 0 : index
      %c0_18 = arith.constant 0 : index
      %22 = vector.load %arg6[%c0_17, %c0_18] : memref<1x128xf32, #tpu.memory_space<vmem>>, vector<1x128xf32>
      %cst_19 = arith.constant 1.000000e-01 : f32
      %23 = vector.broadcast %cst_19 : f32 to vector<1x128xf32>
      %24 = arith.mulf %23, %22 : vector<1x128xf32>
      %25 = arith.addf %21, %24 : vector<1x128xf32>
      %c0_20 = arith.constant 0 : index
      %c0_21 = arith.constant 0 : index
      %26 = vector.load %arg4[%c0_20, %c0_21] : memref<1x128xf32, #tpu.memory_space<vmem>>, vector<1x128xf32>
      tpu.vector_store %arg4[%c0_20, %c0_21], %25 {strides = array<i32>} : memref<1x128xf32, #tpu.memory_space<vmem>>, vector<1x128xf32>,
    } else {
    }
    return
  }
  func.func @transform_0(%arg0: i32, %arg1: i32) -> (i32, i32) {
    %c1_i32 = arith.constant 1 : i32
    %0 = arith.muli %arg0, %c1_i32 : i32
    %1 = arith.addi %0, %arg1 : i32
    %c0_i32 = arith.constant 0 : i32
    %c0_i32_0 = arith.constant 0 : i32
    return %1, %c0_i32 : i32, i32
  }
  func.func @transform_1(%arg0: i32, %arg1: i32) -> (i32, i32) {
    %c1_i32 = arith.constant 1 : i32
    %0 = arith.muli %arg0, %c1_i32 : i32
    %1 = arith.addi %0, %arg1 : i32
    %c0_i32 = arith.constant 0 : i32
    %c0_i32_0 = arith.constant 0 : i32
    return %1, %c0_i32 : i32, i32
  }
  func.func @transform_2(%arg0: i32, %arg1: i32) -> (i32, i32) {
    %c0_i32 = arith.constant 0 : i32
    %c0_i32_0 = arith.constant 0 : i32
    return %arg0, %c0_i32 : i32, i32
  }
}

</mosaic_0001>

<bundles_post_ra>
// kernel: tpu_custom_call.1
= control target key start
LH: loop header
LB: loop body
LE: loop exit
PB: predicated region body
PF: predicated region fallthrough
CT: control target
= control target key end

     0   :  { %7 = vsyncpa [#allocation5], 0  ;;  %s247_s0 = inlined_call_operand.hbm [shape: f32[16,128], index: 0, kind: input, shape index: {}]   ;;  %s248_s1 = inlined_call_operand.hbm [shape: f32[16,128], index: 1, kind: input, shape index: {}]   ;;  %s249_s2 = inlined_call_operand.hbm [shape: f32[1,128], index: 2, kind: output, shape index: {}]  }
   0x1   :  { %8 = vsyncpa [#allocation8], 0 }
   0x2   :  { %9 = vsyncpa [#allocation6], 0  ;;  %s190_s9 = smov [#allocation4]   ;;  %s118_s13 = scalar_lea.hbm %s247_s0, 256 }
   0x3   :  { %s19_s10 = sshll.u32 %s190_s9, 4  ;;  %p119_p0 = scmp.ne.s32.totalorder %s247_s0, %s118_s13  ;;  %s20_s10 = int_to_ptr.vmem [resolvable:$true] %s19_s10 }
   0x4   :  { %p122_p1 = scmp.lt.u32.totalorder %s118_s13, %s247_s0 }
   0x6   :  { %p124_p2 = pnand %p122_p1, %p119_p0 }
   0x8   :  { %127 = shalt.err (!%p124_p2)
}
   0x9   :  { %s128_s18 = scalar_lea.vmem %s20_s10, 256  ;;  %p133_p4 = scmp.lt.s32.totalorder %s20_s10, %s20_s10 }
   0xa   :  { %p129_p3 = scmp.ne.s32.totalorder %s20_s10, %s128_s18  ;;  %p134_p5 = scmp.lt.s32.totalorder %s128_s18, %s128_s18 }
   0xc   :  { %p135_p6 = por %p134_p5, %p133_p4 }
   0xe   :  { %p136_p7 = pnand %p135_p6, %p129_p3 }
  0x10   :  { %139 = shalt.err (!%p136_p7)
}
  0x11   :  { %s191_s19 = smov 128   ;;  %s192_s20 = smov 8  }
  0x12   :  { %25 = dma.hbm_to_vmem [thread:$0]  %s247_s0, 256, %s20_s10, [#allocation5], %s191_s19, %s191_s19, %s192_s20  }
  0x13   :  { %s193_s23 = smov [#allocation7]   ;;  %s140_s27 = scalar_lea.hbm %s248_s1, 256 }
  0x14   :  { %s35_s24 = sshll.u32 %s193_s23, 4  ;;  %p141_p8 = scmp.ne.s32.totalorder %s248_s1, %s140_s27  ;;  %s36_s24 = int_to_ptr.vmem [resolvable:$true] %s35_s24 }
  0x15   :  { %p144_p9 = scmp.lt.u32.totalorder %s140_s27, %s248_s1 }
  0x17   :  { %p146_p10 = pnand %p144_p9, %p141_p8 }
  0x19   :  { %149 = shalt.err (!%p146_p10)
}
  0x1a   :  { %s150_s4 = scalar_lea.vmem %s36_s24, 256  ;;  %p155_p12 = scmp.lt.s32.totalorder %s36_s24, %s36_s24 }
  0x1b   :  { %p151_p11 = scmp.ne.s32.totalorder %s36_s24, %s150_s4  ;;  %p156_p13 = scmp.lt.s32.totalorder %s150_s4, %s150_s4 }
  0x1d   :  { %p157_p0 = por %p156_p13, %p155_p12 }
  0x1f   :  { %p158_p1 = pnand %p157_p0, %p151_p11 }
  0x21   :  { %161 = shalt.err (!%p158_p1)
}
  0x22   :  { %41 = dma.hbm_to_vmem [thread:$0]  %s248_s1, 256, %s36_s24, [#allocation8], %s191_s19, %s191_s19, %s192_s20  }
  0x23   :  { %184 = dma.done.wait [#allocation5], 256  }
  0x24   :  { %185 = vsyncadd [#allocation5], 4294967040 }
  0x25   :  { %186 = dma.done.wait [#allocation8], 256  }
  0x26   :  { %187 = vsyncadd [#allocation8], 4294967040  ;;  %v194_v0 = vmov 0.0   ;;  %v58_v1 = vld [vmem:[#allocation4] sm:$0xff]  ;;  %v59_v2 = vld [vmem:[#allocation4 + $0x8] sm:$0xff]  ;;  %s195_s1 = smov [#allocation9]  }
  0x27   :  { %57 = vst [vmem:[#allocation3] sm:$0x1] %v194_v0  ;;  %56 = vst [vmem:[#allocation2] sm:$0x1] %v194_v0  ;;  %v60_v3 = vld [vmem:[#allocation7] sm:$0xff]  ;;  %v61_v4 = vld [vmem:[#allocation7 + $0x8] sm:$0xff] }
  0x28   :  { %v62_v5 = vsub.f32 %v58_v1, %v60_v3  ;;  %v63_v6 = vsub.f32 %v59_v2, %v61_v4  ;;  %s102_s6 = sshll.u32 %s195_s1, 4  ;;  %s103_s6 = int_to_ptr.vmem [resolvable:$true] %s102_s6 }
  0x29   :  { %s162_s7 = scalar_lea.vmem %s103_s6, 16  ;;  %s166_s8 = scalar_lea.vmem %s103_s6, 32 }
  0x2a   :  { %v77_v7 = vand.u32 2147483647, %v62_v5  ;;  %v65_v8 = vmul.f32 %v62_v5, %v62_v5  ;;  %v78_v9 = vand.u32 2147483647, %v63_v6  ;;  %v66_v10 = vmul.f32 %v63_v6, %v63_v6  ;;  %p163_p2 = scmp.ne.s32.totalorder %s103_s6, %s162_s7  ;;  %p167_p3 = scmp.lt.s32.totalorder %s103_s6, %s103_s6 }
  0x2b   :  { %p168_p4 = scmp.lt.s32.totalorder %s166_s8, %s162_s7 }
  0x2c   :  { %v79_v11 = vadd.f32 %v78_v9, %v77_v7  ;;  %v67_v12 = vadd.f32 %v66_v10, %v65_v8 }
  0x2d   :  { %p169_p5 = por %p168_p4, %p167_p3 }
  0x2e   :  { %v80_v13 = vrot.slane %v79_v11, 4  ;;  %v68_v14 = vrot.slane %v67_v12, 4  ;;  %v76_v23 = vld [vmem:[#allocation3] sm:$0x1]  ;;  %v64_v24 = vld [vmem:[#allocation2] sm:$0x1] }
  0x2f   :  { %p170_p6 = pnand %p169_p5, %p163_p2 }
  0x30   :  { %v81_v15 = vadd.f32 %v80_v13, %v79_v11  ;;  %v69_v16 = vadd.f32 %v68_v14, %v67_v12 }
  0x32   :  { %v82_v17 = vrot.slane %v81_v15, 2  ;;  %v70_v18 = vrot.slane %v69_v16, 2 }
  0x34   :  { %v83_v19 = vadd.f32 %v82_v17, %v81_v15  ;;  %v71_v20 = vadd.f32 %v70_v18, %v69_v16 }
  0x36   :  { %v84_v21 = vrot.slane %v83_v19, 1  ;;  %v72_v22 = vrot.slane %v71_v20, 1 }
  0x38   :  { %v85_v25 = vadd.f32 %v84_v21, %v83_v19  ;;  %v73_v26 = vadd.f32 %v72_v22, %v71_v20 }
  0x3a   :  { %v86_v27 = vadd.f32 %v85_v25, %v76_v23  ;;  %v74_v28 = vadd.f32 %v73_v26, %v64_v24 }
  0x3c   :  { %87 = vst [vmem:[#allocation3] sm:$0x1] %v86_v27  ;;  %75 = vst [vmem:[#allocation2] sm:$0x1] %v74_v28 }
  0x43   :  { %v91_v29 = vld [vmem:[#allocation2] sm:$0x1]  ;;  %v92_v30 = vld [vmem:[#allocation3] sm:$0x1] }
  0x44   :  { %v93_v31 = vmul.f32 0.1, %v92_v30 }
  0x46   :  { %v94_v32 = vadd.f32 %v93_v31, %v91_v29 }
  0x48   :  { %95 = vst [vmem:[#allocation9] sm:$0x1] %v94_v32 }
  0x49   :  { %173 = shalt.err (!%p170_p6)
}
  0x4a   :  { %s174_s11 = scalar_lea.hbm %s249_s2, 16 }
  0x4b   :  { %p175_p7 = scmp.ne.s32.totalorder %s249_s2, %s174_s11  ;;  %p178_p8 = scmp.lt.u32.totalorder %s174_s11, %s249_s2 }
  0x4d   :  { %p180_p9 = pnand %p178_p8, %p175_p7 }
  0x4f   :  { %183 = shalt.err (!%p180_p9)
}
  0x50   :  { %105 = dma.vmem_to_hbm [thread:$0]  %s103_s6, 16, %s249_s2, [#allocation6]  }
  0x51   :  { %188 = dma.done.wait [#allocation6], 16  }
  0x52   :  { %189 = vsyncadd [#allocation6], 4294967280 }
  0x53   :  { %109 = vsyncpa [#allocation5], 1 }
  0x54   :  { %110 = vsyncpa [#allocation8], 1 }
  0x55   :  { %111 = vsyncpa [#allocation6], 1 }

</bundles_post_ra>
